<compile_context>
chip_gen: v7x
topology: tpu7x:2x2x1
jax: 0.10.0
libtpu: 0.0.40
codegen_flags: <defaults>
</compile_context>

<pallas_src>
import functools

import jax
import jax.numpy as jnp
from jax.experimental import pallas as pl
from jax.experimental.pallas import tpu as pltpu


_LANE = 128
_MAX_BLOCK_BYTES = 12 * 1024 * 1024   # per input block (pipeline double-buffers)
_MIN_BLOCK_BYTES = 1 * 1024 * 1024    # don't shrink below this for 2-TC split
_MAX_S_TILE = 256 * _LANE             # 32768 lanes: bounds the unrolled lane fold
_VMEM_HEADROOM = 4 * 1024 * 1024


def _sublane_pack(itemsize):
    # Rows per sublane tile: 8 for 4-byte, 16 for 2-byte, 32 for 1-byte dtypes.
    return max(8, 32 // max(int(itemsize), 1))


def _min_value(dtype):
    dtype = jnp.dtype(dtype)
    if jnp.issubdtype(dtype, jnp.floating):
        return float("-inf")
    return int(jnp.iinfo(dtype).min)


def _spatial_reduce_kernel(x_ref, o_ref, acc_ref, *, reduction, spatial,
                           s_tile, mask_s, use_lane_acc):
    if not use_lane_acc:
        # Single S step (s_tile == S, S not a multiple of 128): reduce directly.
        x = x_ref[...]
        if reduction == "max":
            out = jnp.max(x, axis=-1, keepdims=True)
        else:
            out = jnp.sum(x.astype(jnp.float32), axis=-1,
                          keepdims=True) * (1.0 / spatial)
        o_ref[...] = out.astype(o_ref.dtype)
        return

    s = pl.program_id(1)
    last = pl.num_programs(1) - 1
    n_sub = s_tile // _LANE

    @pl.when(s == 0)
    def _init():
        if reduction == "max":
            acc_ref[...] = jnp.full(acc_ref.shape, _min_value(acc_ref.dtype),
                                    acc_ref.dtype)
        else:
            acc_ref[...] = jnp.zeros_like(acc_ref)

    def _accumulate(get_chunk):
        # Fold the s_tile//128 lane tiles with pure VPU max/add; no cross-lane
        # (XLU) work and no sublane->lane relayout on the per-step path.
        part = get_chunk(0)
        for m in range(1, n_sub):
            c = get_chunk(m)
            part = jnp.maximum(part, c) if reduction == "max" else part + c
        if reduction == "max":
            acc_ref[...] = jnp.maximum(acc_ref[...], part)
        else:
            acc_ref[...] = acc_ref[...] + part

    def _clean_chunk(m):
        c = x_ref[:, m * _LANE:(m + 1) * _LANE]
        return c if reduction == "max" else c.astype(jnp.float32)

    def _masked_chunk(m):
        c = x_ref[:, m * _LANE:(m + 1) * _LANE]
        lane = jax.lax.broadcasted_iota(jnp.int32, (1, _LANE), 1)
        valid = (s * s_tile + m * _LANE + lane) < spatial
        if reduction == "max":
            return jnp.where(valid, c, jnp.array(_min_value(c.dtype), c.dtype))
        return jnp.where(valid, c.astype(jnp.float32), 0.0)

    def _finalize():
        acc = acc_ref[...]
        if reduction == "max":
            out = jnp.max(acc, axis=-1, keepdims=True)
        else:
            out = jnp.sum(acc, axis=-1, keepdims=True) * (1.0 / spatial)
        o_ref[...] = out.astype(o_ref.dtype)

    if mask_s:
        # Only the final, partial S tile pays for the masking work.
        @pl.when(s < last)
        def _():
            _accumulate(_clean_chunk)

        @pl.when(s == last)
        def _():
            _accumulate(_masked_chunk)
            _finalize()
    else:
        _accumulate(_clean_chunk)

        @pl.when(s == last)
        def _():
            _finalize()


def _choose_tiles(R, S, itemsize):
    """Pick (row_tile, s_tile) for (R, S) input blocks."""
    pack = _sublane_pack(itemsize)
    row_cap = R if R <= pack else pack * (R // pack)

    # Spatial tile: whole S when small enough, else a large multiple of 128
    # (>= ~64 KiB contiguous DMA run per row for f32, bounded lane-fold unroll).
    if S <= _MAX_S_TILE:
        s_tile = S
    else:
        s_tile = min(_MAX_S_TILE, (S // _LANE) * _LANE)

    # Fill the block budget with rows (dense sublanes).
    bytes_per_group = max(pack * s_tile * itemsize, 1)
    groups = max(1, _MAX_BLOCK_BYTES // bytes_per_group)
    row_tile = min(row_cap, groups * pack)

    # Keep >= 2 tiles on the parallel row axis when possible so both v7x
    # TensorCores get work — but never shrink blocks below ~1 MiB for it.
    total_groups = -(-R // pack)
    if total_groups >= 2:
        cap = pack * (-(-total_groups // 2))
        if cap < row_tile and cap * s_tile * itemsize >= _MIN_BLOCK_BYTES:
            row_tile = cap
    return row_tile, s_tile


def _sanitize_row_tile(rt, R, pack):
    rt = max(1, min(int(rt), R))
    if rt == R:
        return R
    rt = (rt // pack) * pack          # must be a multiple of 8 unless == R
    if rt < pack:
        return R if R < pack else pack
    return rt


def _sanitize_s_tile(st, S):
    st = max(1, min(int(st), S))
    if st >= S:
        return S
    st = max(_LANE, (st // _LANE) * _LANE)   # multiple of 128 unless == S
    return S if st >= S else st


def spatial_reduce(x, reduction, *, row_tile=None, s_tile=None):
    """x: (B, C, *spatial) array. Returns (B, C), matching torch semantics."""
    if reduction not in ("max", "mean"):
        raise ValueError("Unknown reduction {}.".format(reduction))

    B, C = x.shape[0], x.shape[1]
    S = 1
    for d in x.shape[2:]:
        S *= int(d)
    R = B * C
    x2 = x.reshape(R, S)                 # free row-major reshape, no transpose

    itemsize = jnp.dtype(x2.dtype).itemsize
    pack = _sublane_pack(itemsize)
    auto_rt, auto_st = _choose_tiles(R, S, itemsize)
    row_tile = auto_rt if row_tile is None else _sanitize_row_tile(row_tile, R, pack)
    s_tile = auto_st if s_tile is None else _sanitize_s_tile(s_tile, S)

    grid_r = pl.cdiv(R, row_tile)
    grid_s = pl.cdiv(S, s_tile)
    mask_s = (S % s_tile) != 0
    use_lane_acc = (s_tile % _LANE) == 0

    # max is exact in the native dtype (no casts); mean accumulates in f32.
    acc_dtype = x2.dtype if reduction == "max" else jnp.float32

    kernel = functools.partial(
        _spatial_reduce_kernel, reduction=reduction, spatial=S,
        s_tile=s_tile, mask_s=mask_s, use_lane_acc=use_lane_acc)

    # VMEM limit derived from the actual (sublane/lane padded) block footprint:
    # 2x double-buffered input + 2x output + accumulator + headroom.
    def _pad(n, g):
        return -(-n // g) * g
    in_block = _pad(row_tile, pack) * _pad(s_tile, _LANE) * itemsize
    out_block = _pad(row_tile, pack) * _LANE * itemsize
    acc_block = _pad(row_tile, 8) * _LANE * jnp.dtype(acc_dtype).itemsize
    vmem_limit = 2 * in_block + 2 * out_block + acc_block + _VMEM_HEADROOM
    vmem_limit = int(min(max(vmem_limit, 16 * 1024 * 1024), 48 * 1024 * 1024))

    out = pl.pallas_call(
        kernel,
        out_shape=jax.ShapeDtypeStruct((R, 1), x2.dtype),
        grid_spec=pltpu.PrefetchScalarGridSpec(
            num_scalar_prefetch=0,
            grid=(grid_r, grid_s),
            in_specs=[pl.BlockSpec((row_tile, s_tile), lambda r, s: (r, s))],
            # Output block index constant across the S (reduction) axis.
            out_specs=pl.BlockSpec((row_tile, 1), lambda r, s: (r, 0)),
            scratch_shapes=[pltpu.VMEM((row_tile, _LANE), acc_dtype)],
        ),
        compiler_params=pltpu.CompilerParams(
            dimension_semantics=("parallel", "arbitrary"),
            vmem_limit_bytes=vmem_limit,
        ),
    )(x2)
    return out.reshape(B, C)


def _reference(x, reduction):
    B, C = x.shape[0], x.shape[1]
    flat = x.reshape(B, C, -1).astype(jnp.float32)
    if reduction == "max":
        return jnp.max(flat, axis=2)
    return jnp.mean(flat, axis=2)


if __name__ == "__main__":
    key = jax.random.PRNGKey(0)
    ok = True

    # 1) Small f32 case: lane-accumulator path, single S step (S = 256).
    B, C, H, W = 2, 4, 16, 16
    x = jax.random.normal(key, (B, C, H, W), dtype=jnp.float32)
    for reduction in ("max", "mean"):
        out = spatial_reduce(x, reduction)
        jax.block_until_ready(out)
        ref = _reference(x, reduction)
        ok &= out.shape == (B, C)
        ok &= bool(jnp.allclose(out.astype(jnp.float32), ref, atol=1e-5, rtol=1e-5))

    # 2) S = 300 (not a multiple of 128), R = 12.  Forced tiling exercises the
    #    masked final S tile, multi-step accumulator and a partial row block;
    #    auto tiling exercises the direct (un-tiled S) path.
    B2, C2, H2, W2 = 3, 4, 15, 20
    x2 = jax.random.normal(jax.random.PRNGKey(1), (B2, C2, H2, W2),
                           dtype=jnp.float32)
    for reduction in ("max", "mean"):
        ref2 = _reference(x2, reduction)
        out2 = spatial_reduce(x2, reduction, row_tile=8, s_tile=128)
        jax.block_until_ready(out2)
        ok &= out2.shape == (B2, C2)
        ok &= bool(jnp.allclose(out2.astype(jnp.float32), ref2, atol=1e-5, rtol=1e-5))
        out2b = spatial_reduce(x2, reduction)
        jax.block_until_ready(out2b)
        ok &= bool(jnp.allclose(out2b.astype(jnp.float32), ref2, atol=1e-5, rtol=1e-5))

    # 3) bf16 input (sublane packing 16; R < pack -> full-R row block).
    x3 = jax.random.normal(jax.random.PRNGKey(2), (2, 4, 16, 16),
                           dtype=jnp.bfloat16)
    for reduction in ("max", "mean"):
        out3 = spatial_reduce(x3, reduction)
        jax.block_until_ready(out3)
        ref3 = _reference(x3, reduction)
        ok &= out3.shape == (2, 4)
        ok &= bool(jnp.allclose(out3.astype(jnp.float32), ref3, atol=2e-2, rtol=2e-2))

    if ok:
        print("KERNEL_OK")
</pallas_src>

<mosaic_0001>
module attributes {stable_mosaic.version = 11 : i64} {
  func.func @_spatial_reduce_kernel(%arg0: i32, %arg1: i32, %arg2: memref<8x256xf32, #tpu.memory_space<vmem>>, %arg3: memref<8x1xf32, #tpu.memory_space<vmem>>, %arg4: memref<8x128xf32, #tpu.memory_space<vmem>>) attributes {dimension_semantics = [#tpu.dimension_semantics<parallel>, #tpu.dimension_semantics<arbitrary>], iteration_bounds = array<i64: 1, 1>, scalar_prefetch = 0 : i64, scratch_operands = 1 : i64, tpu.core_type = #tpu.core_type<tc>, window_params = [{transform_indices = @transform_0, window_bounds = array<i64: 8, 256>}, {transform_indices = @transform_1, window_bounds = array<i64: 8, 1>}]} {
    %c0_i32 = arith.constant 0 : i32
    %0 = arith.cmpi eq, %arg1, %c0_i32 : i32
    %1 = arith.extui %0 : i1 to i32
    %c0_i32_0 = arith.constant 0 : i32
    %2 = arith.cmpi ne, %1, %c0_i32_0 : i32
    scf.if %2 {
      %cst = arith.constant 0xFF800000 : f32
      %12 = vector.broadcast %cst : f32 to vector<8x128xf32>
      %c0_9 = arith.constant 0 : index
      %c0_10 = arith.constant 0 : index
      %13 = vector.load %arg4[%c0_9, %c0_10] : memref<8x128xf32, #tpu.memory_space<vmem>>, vector<8x128xf32>
      tpu.vector_store %arg4[%c0_9, %c0_10], %12 {strides = array<i32>} : memref<8x128xf32, #tpu.memory_space<vmem>>, vector<8x128xf32>,
    } else {
    }
    %c0 = arith.constant 0 : index
    %c0_1 = arith.constant 0 : index
    %3 = vector.load %arg2[%c0, %c0_1] : memref<8x256xf32, #tpu.memory_space<vmem>>, vector<8x128xf32>
    %c0_2 = arith.constant 0 : index
    %c128 = arith.constant 128 : index
    %4 = vector.load %arg2[%c0_2, %c128] : memref<8x256xf32, #tpu.memory_space<vmem>>, vector<8x128xf32>
    %5 = arith.maximumf %3, %4 : vector<8x128xf32>
    %c0_3 = arith.constant 0 : index
    %c0_4 = arith.constant 0 : index
    %6 = vector.load %arg4[%c0_3, %c0_4] : memref<8x128xf32, #tpu.memory_space<vmem>>, vector<8x128xf32>
    %7 = arith.maximumf %6, %5 : vector<8x128xf32>
    %c0_5 = arith.constant 0 : index
    %c0_6 = arith.constant 0 : index
    %8 = vector.load %arg4[%c0_5, %c0_6] : memref<8x128xf32, #tpu.memory_space<vmem>>, vector<8x128xf32>
    tpu.vector_store %arg4[%c0_5, %c0_6], %7 {strides = array<i32>} : memref<8x128xf32, #tpu.memory_space<vmem>>, vector<8x128xf32>,
    %c0_i32_7 = arith.constant 0 : i32
    %9 = arith.cmpi eq, %arg1, %c0_i32_7 : i32
    %10 = arith.extui %9 : i1 to i32
    %c0_i32_8 = arith.constant 0 : i32
    %11 = arith.cmpi ne, %10, %c0_i32_8 : i32
    scf.if %11 {
      %c0_9 = arith.constant 0 : index
      %c0_10 = arith.constant 0 : index
      %12 = vector.load %arg4[%c0_9, %c0_10] : memref<8x128xf32, #tpu.memory_space<vmem>>, vector<8x128xf32>
      %cst = arith.constant dense<0xFF800000> : vector<8xf32>
      %13 = vector.multi_reduction <maximumf>, %12, %cst [1] : vector<8x128xf32> to vector<8xf32>
      %14 = vector.shape_cast %13 : vector<8xf32> to vector<8x1xf32>
      %c0_11 = arith.constant 0 : index
      %c0_12 = arith.constant 0 : index
      %15 = vector.load %arg3[%c0_11, %c0_12] : memref<8x1xf32, #tpu.memory_space<vmem>>, vector<8x1xf32>
      tpu.vector_store %arg3[%c0_11, %c0_12], %14 {strides = array<i32>} : memref<8x1xf32, #tpu.memory_space<vmem>>, vector<8x1xf32>,
    } else {
    }
    return
  }
  func.func @transform_0(%arg0: i32, %arg1: i32) -> (i32, i32) {
    %c0_i32 = arith.constant 0 : i32
    return %arg0, %arg1 : i32, i32
  }
  func.func @transform_1(%arg0: i32, %arg1: i32) -> (i32, i32) {
    %c0_i32 = arith.constant 0 : i32
    %c0_i32_0 = arith.constant 0 : i32
    return %arg0, %c0_i32 : i32, i32
  }
}

</mosaic_0001>

<bundles_post_ra>
// kernel: tpu_custom_call.1
= control target key start
LH: loop header
LB: loop body
LE: loop exit
PB: predicated region body
PF: predicated region fallthrough
CT: control target
= control target key end

     0   :  { %6 = vsyncpa [#allocation4], 0  ;;  %s69_s6 = smov [#allocation3]   ;;  %s95_s0 = inlined_call_operand.hbm [shape: f32[8,256], index: 0, kind: input, shape index: {}]   ;;  %s96_s1 = inlined_call_operand.vmem [shape: f32[8,1], index: 1, kind: output, shape index: {}]  }
   0x1   :  { %s13_s7 = sshll.u32 %s69_s6, 4  ;;  %s45_s10 = scalar_lea.hbm %s95_s0, 256  ;;  %s14_s7 = int_to_ptr.vmem [resolvable:$true] %s13_s7 }
   0x2   :  { %p46_p0 = scmp.ne.s32.totalorder %s95_s0, %s45_s10  ;;  %p49_p1 = scmp.lt.u32.totalorder %s45_s10, %s95_s0 }
   0x4   :  { %p51_p2 = pnand %p49_p1, %p46_p0 }
   0x6   :  { %54 = shalt.err (!%p51_p2)
}
   0x7   :  { %s55_s15 = scalar_lea.vmem %s14_s7, 256  ;;  %p60_p4 = scmp.lt.s32.totalorder %s14_s7, %s14_s7 }
   0x8   :  { %p56_p3 = scmp.ne.s32.totalorder %s14_s7, %s55_s15  ;;  %p61_p5 = scmp.lt.s32.totalorder %s55_s15, %s55_s15 }
   0xa   :  { %p62_p6 = por %p61_p5, %p60_p4 }
   0xc   :  { %p63_p7 = pnand %p62_p6, %p56_p3 }
   0xe   :  { %66 = shalt.err (!%p63_p7)
}
   0xf   :  { %16 = dma.hbm_to_vmem [thread:$0]  %s95_s0, 256, %s14_s7, [#allocation4]  }
  0x10   :  { %67 = dma.done.wait [#allocation4], 256  }
  0x11   :  { %68 = vsyncadd [#allocation4], 4294967040  ;;  %v25_v0 = vld [vmem:[#allocation3] sm:$0xff]  ;;  %v26_v1 = vld [vmem:[#allocation3 + $0x8] sm:$0xff]  ;;  %vm37_vm0 = vcmask 7168  }
  0x12   :  { %v27_v2 = vmax.f32 %v25_v0, %v26_v1 }
  0x14   :  { %35 = vmax.xlane.f32.xlu0 %v27_v2 }
  0xa1   :  { %v36_v3 = vpop.xlane.xlu0 %35 }
  0xa2   :  { %38 = vst.msk [vmem:[%s96_s1] sm:$0xff] %vm37_vm0, %v36_v3 }
  0xa3   :  { %43 = vsyncpa [#allocation4], 1 }

</bundles_post_ra>
